<compile_context>
chip_gen: v7x
topology: tpu7x:2x2x1
jax: 0.10.0
libtpu: 0.0.40
codegen_flags: <defaults>
</compile_context>

<pallas_src>
import functools

import jax
import jax.numpy as jnp
from jax import lax
from jax.experimental import pallas as pl
from jax.experimental.pallas import tpu as pltpu

_EPS = 1e-5
# v7x has 64 MiB physical VMEM (v5e/v6e: 128 MiB); budget double-buffered
# tiles well under the smallest and set the scoped limit explicitly.
_VMEM_LIMIT_BYTES = 48 * 1024 * 1024
_TILE_VMEM_BUDGET = 20 * 1024 * 1024


def _round_up(x, m):
    return (x + m - 1) // m * m


def _pick_tile_m(m_rows, k_pad, c_pad):
    """Largest M tile (multiple of 16 for bf16 sublane packing) whose
    double-buffered tiles + resident weights stay under the VMEM budget."""
    tm = 2048
    while tm > 16:
        conv_need = (2 * tm * k_pad * 2      # taps tile, bf16, double-buffered
                     + 2 * tm * c_pad * 4    # y tile, f32, double-buffered
                     + k_pad * c_pad * 2     # resident weights, bf16
                     + 4 * c_pad * 4)        # stats
        apply_need = 4 * 2 * tm * c_pad * 4  # y / residual / out tiles, f32
        if max(conv_need, apply_need) <= _TILE_VMEM_BUDGET:
            break
        tm //= 2
    return min(tm, _round_up(m_rows, 16))


def _pad2d(a, rows, cols):
    return jnp.pad(a, ((0, rows - a.shape[0]), (0, cols - a.shape[1])))


# ---------------------------------------------------------------------------
# Pass 1: conv tile (single MXU matmul, K = 9*Cin) + BN statistics.
# ---------------------------------------------------------------------------
def _conv_stats_kernel(taps_ref, w_ref, y_ref, stats_ref):
    @pl.when(pl.program_id(0) == 0)
    def _():
        stats_ref[...] = jnp.zeros_like(stats_ref)

    # bf16 x bf16 -> f32 accumulate (DEFAULT precision, single MXU pass).
    y = jnp.dot(taps_ref[...], w_ref[...], preferred_element_type=jnp.float32)
    y_ref[...] = y
    # Two-pass BN: accumulate per-channel sum and sum-of-squares
    # (var computed later as E[x^2] - E[x]^2) in the resident stats block.
    stats_ref[0:1, :] += jnp.sum(y, axis=0, keepdims=True)
    stats_ref[1:2, :] += jnp.sum(y * y, axis=0, keepdims=True)


def _conv_stats(taps, w, *, tile_m):
    mp, kp = taps.shape
    cp = w.shape[1]
    return pl.pallas_call(
        _conv_stats_kernel,
        out_shape=(jax.ShapeDtypeStruct((mp, cp), jnp.float32),
                   jax.ShapeDtypeStruct((2, cp), jnp.float32)),
        grid_spec=pltpu.PrefetchScalarGridSpec(
            num_scalar_prefetch=0,
            grid=(mp // tile_m,),
            in_specs=[
                pl.BlockSpec((tile_m, kp), lambda i: (i, 0)),
                pl.BlockSpec((kp, cp), lambda i: (0, 0)),    # resident weights
            ],
            out_specs=[
                pl.BlockSpec((tile_m, cp), lambda i: (i, 0)),
                pl.BlockSpec((2, cp), lambda i: (0, 0)),     # resident accumulator
            ],
        ),
        compiler_params=pltpu.CompilerParams(
            dimension_semantics=("arbitrary",),  # stats accumulate across tiles
            vmem_limit_bytes=_VMEM_LIMIT_BYTES),
    )(taps, w)


# ---------------------------------------------------------------------------
# Pass 2: BN apply (+ optional residual, optionally itself BN-normalized,
#         + optional ReLU), tiled over M and megacore-parallel.
# ---------------------------------------------------------------------------
def _bn_apply_kernel(*refs, inv_m, eps, relu, res_mode):
    if res_mode == 0:            # no residual
        y_ref, stats_ref, gb_ref, out_ref = refs
        res_ref = res_stats_ref = res_gb_ref = None
    elif res_mode == 1:          # raw (identity) residual
        y_ref, stats_ref, gb_ref, res_ref, out_ref = refs
        res_stats_ref = res_gb_ref = None
    else:                        # residual = BN(downsample-conv output)
        (y_ref, stats_ref, gb_ref,
         res_ref, res_stats_ref, res_gb_ref, out_ref) = refs

    def normalize(y, stats, gb):
        mean = stats[0:1, :] * inv_m
        var = jnp.maximum(stats[1:2, :] * inv_m - mean * mean, 0.0)
        scale = gb[0:1, :] * lax.rsqrt(var + eps)
        shift = gb[1:2, :] - mean * scale
        return y * scale + shift

    out = normalize(y_ref[...], stats_ref[...], gb_ref[...])
    if res_mode == 1:
        out = out + res_ref[...]
    elif res_mode == 2:
        out = out + normalize(res_ref[...], res_stats_ref[...], res_gb_ref[...])
    if relu:
        out = jnp.maximum(out, 0.0)
    out_ref[...] = out


def _bn_apply(y, stats, gb, *, tile_m, true_m, relu,
              residual=None, residual_stats=None, residual_gb=None):
    mp, cp = y.shape
    row_spec = pl.BlockSpec((tile_m, cp), lambda i: (i, 0))
    par_spec = pl.BlockSpec((2, cp), lambda i: (0, 0))

    inputs = [y, stats, gb]
    in_specs = [row_spec, par_spec, par_spec]
    if residual is None:
        res_mode = 0
    elif residual_stats is None:
        res_mode = 1
        inputs += [residual]
        in_specs += [row_spec]
    else:
        res_mode = 2
        inputs += [residual, residual_stats, residual_gb]
        in_specs += [row_spec, par_spec, par_spec]

    kernel = functools.partial(
        _bn_apply_kernel, inv_m=1.0 / float(true_m), eps=_EPS,
        relu=relu, res_mode=res_mode)

    return pl.pallas_call(
        kernel,
        out_shape=jax.ShapeDtypeStruct((mp, cp), jnp.float32),
        grid_spec=pltpu.PrefetchScalarGridSpec(
            num_scalar_prefetch=0, grid=(mp // tile_m,),
            in_specs=in_specs, out_specs=row_spec),
        compiler_params=pltpu.CompilerParams(
            dimension_semantics=("parallel",),   # independent tiles (megacore)
            vmem_limit_bytes=_VMEM_LIMIT_BYTES),
    )(*inputs)


# ---------------------------------------------------------------------------
# BasicBlock forward (PyTorch semantics) built from the two Pallas passes.
# ---------------------------------------------------------------------------
def _w_to_mat(w_oihw):
    """PyTorch conv weight (Cout, Cin, kh, kw) -> (kh*kw*Cin, Cout),
    tap-major / channel-minor to match the im2col column order."""
    c_out, c_in, kh, kw = w_oihw.shape
    return jnp.transpose(w_oihw, (2, 3, 1, 0)).reshape(kh * kw * c_in, c_out)


def basic_block_forward(x_nchw, params, stride):
    n, c_in, h, w = x_nchw.shape
    c_out = params["w1"].shape[0]
    ho = (h + 2 - 3) // stride + 1
    wo = (w + 2 - 3) // stride + 1
    m = n * ho * wo

    cp = _round_up(c_out, 128)          # lane-dense output channels
    k1 = _round_up(9 * c_in, 128)       # conv1 contraction (single matmul)
    k2 = _round_up(9 * c_out, 128)      # conv2 contraction
    kd = _round_up(c_in, 128)           # 1x1 downsample contraction
    tile_m = _pick_tile_m(m, max(k1, k2, kd), cp)
    mp = _round_up(m, tile_m)           # padded rows contribute 0 to BN sums

    x = jnp.transpose(x_nchw, (0, 2, 3, 1)).astype(jnp.float32)   # NHWC

    # im2col as a single lane-dense (M, 9*C) array -> one K=9*C matmul.
    # TODO(synk): replace with an in-kernel halo-slab DMA so the 9x-expanded
    # patches are never materialized in HBM at all.
    def im2col3x3(x_nhwc, s):
        c = x_nhwc.shape[-1]
        xp = jnp.pad(x_nhwc, ((0, 0), (1, 1), (1, 1), (0, 0)))
        cols = []
        for kh in range(3):
            for kw in range(3):
                cols.append(xp[:, kh:kh + s * (ho - 1) + 1:s,
                               kw:kw + s * (wo - 1) + 1:s, :])
        return jnp.concatenate(cols, axis=-1).reshape(m, 9 * c)

    def prep(mat, rows, cols):          # pad + cast matmul operands to bf16
        return _pad2d(mat, rows, cols).astype(jnp.bfloat16)

    def gb(g, b):
        return _pad2d(jnp.stack([g, b], axis=0), 2, cp)

    # -- conv1 + bn1 + relu ---------------------------------------------------
    y1, s1 = _conv_stats(prep(im2col3x3(x, stride), mp, k1),
                         prep(_w_to_mat(params["w1"]), k1, cp), tile_m=tile_m)
    h1 = _bn_apply(y1, s1, gb(params["g1"], params["b1"]),
                   tile_m=tile_m, true_m=m, relu=True)

    # -- conv2 (+ bn2 + residual + relu fused in the final apply pass) --------
    h1_nhwc = h1[:m, :c_out].reshape(n, ho, wo, c_out)
    y2, s2 = _conv_stats(prep(im2col3x3(h1_nhwc, 1), mp, k2),
                         prep(_w_to_mat(params["w2"]), k2, cp), tile_m=tile_m)
    gb2 = gb(params["g2"], params["b2"])

    if stride != 1 or c_in != c_out:
        # Downsample: 1x1 strided conv + BN; its BN-apply is fused into the
        # final pass so the normalized residual never round-trips HBM.
        x_s = x[:, ::stride, ::stride, :][:, :ho, :wo, :].reshape(m, c_in)
        w_d = params["w_ds"].reshape(c_out, c_in).T
        yd, sd = _conv_stats(prep(x_s, mp, kd), prep(w_d, kd, cp),
                             tile_m=tile_m)
        out = _bn_apply(y2, s2, gb2, tile_m=tile_m, true_m=m, relu=True,
                        residual=yd, residual_stats=sd,
                        residual_gb=gb(params["g_ds"], params["b_ds"]))
    else:
        res = _pad2d(x.reshape(m, c_in), mp, cp)      # identity residual
        out = _bn_apply(y2, s2, gb2, tile_m=tile_m, true_m=m, relu=True,
                        residual=res)

    out = out[:m, :c_out].reshape(n, ho, wo, c_out)
    return jnp.transpose(out, (0, 3, 1, 2))           # back to NCHW


# ---------------------------------------------------------------------------
# Pure-JAX reference (NCHW, f32 HIGHEST) for correctness checking.
# ---------------------------------------------------------------------------
def reference_forward(x, params, stride, eps=_EPS):
    def conv(inp, w, s, pad):
        return lax.conv_general_dilated(
            inp, w, (s, s), [(pad, pad), (pad, pad)],
            dimension_numbers=("NCHW", "OIHW", "NCHW"),
            precision=lax.Precision.HIGHEST)

    def bn(inp, g, b):
        mean = jnp.mean(inp, axis=(0, 2, 3), keepdims=True)
        var = jnp.mean((inp - mean) ** 2, axis=(0, 2, 3), keepdims=True)
        return ((inp - mean) * lax.rsqrt(var + eps) * g.reshape(1, -1, 1, 1)
                + b.reshape(1, -1, 1, 1))

    c_in, c_out = x.shape[1], params["w1"].shape[0]
    if stride != 1 or c_in != c_out:
        residual = bn(conv(x, params["w_ds"], stride, 0),
                      params["g_ds"], params["b_ds"])
    else:
        residual = x
    out = jnp.maximum(bn(conv(x, params["w1"], stride, 1),
                         params["g1"], params["b1"]), 0.0)
    out = bn(conv(out, params["w2"], 1, 1), params["g2"], params["b2"])
    return jnp.maximum(out + residual, 0.0)


# ---------------------------------------------------------------------------
if __name__ == "__main__":
    def make_params(key, c_in, c_out, with_ds):
        ks = jax.random.split(key, 7)
        p = {
            "w1": 0.1 * jax.random.normal(ks[0], (c_out, c_in, 3, 3), jnp.float32),
            "w2": 0.1 * jax.random.normal(ks[1], (c_out, c_out, 3, 3), jnp.float32),
            "g1": 1.0 + 0.1 * jax.random.normal(ks[2], (c_out,), jnp.float32),
            "b1": 0.1 * jax.random.normal(ks[3], (c_out,), jnp.float32),
            "g2": 1.0 + 0.1 * jax.random.normal(ks[4], (c_out,), jnp.float32),
            "b2": 0.1 * jax.random.normal(ks[5], (c_out,), jnp.float32),
        }
        if with_ds:
            p["w_ds"] = 0.1 * jax.random.normal(ks[6], (c_out, c_in, 1, 1),
                                                jnp.float32)
            p["g_ds"] = jnp.ones((c_out,), jnp.float32)
            p["b_ds"] = jnp.zeros((c_out,), jnp.float32)
        return p

    key = jax.random.PRNGKey(0)
    k_ds, k_id, k_x1, k_x2 = jax.random.split(key, 4)

    # Case 1: downsample branch (stride=2, channel expansion 4 -> 8).
    N, C_IN, H, W, C_OUT, STRIDE = 2, 4, 16, 16, 8, 2
    params = make_params(k_ds, C_IN, C_OUT, True)
    x = jax.random.normal(k_x1, (N, C_IN, H, W), jnp.float32)

    fwd = jax.jit(functools.partial(basic_block_forward, stride=STRIDE))
    out = jax.block_until_ready(fwd(x, params))
    assert out.shape == (N, C_OUT, H // STRIDE, W // STRIDE), out.shape

    ref = jax.block_until_ready(reference_forward(x, params, STRIDE))
    # Conv matmuls run at bf16 MXU precision with f32 accumulation -> 2e-2 tol.
    err = float(jnp.max(jnp.abs(out - ref)))
    assert jnp.allclose(out, ref, rtol=2e-2, atol=2e-2), err

    # Case 2: identity residual (stride=1, c_in == c_out).
    params_id = make_params(k_id, 8, 8, False)
    x2 = jax.random.normal(k_x2, (2, 8, 16, 16), jnp.float32)
    fwd_id = jax.jit(functools.partial(basic_block_forward, stride=1))
    out2 = jax.block_until_ready(fwd_id(x2, params_id))
    assert out2.shape == (2, 8, 16, 16), out2.shape
    ref2 = jax.block_until_ready(reference_forward(x2, params_id, 1))
    err2 = float(jnp.max(jnp.abs(out2 - ref2)))
    assert jnp.allclose(out2, ref2, rtol=2e-2, atol=2e-2), err2

    print("KERNEL_OK")
</pallas_src>

<mosaic_0001>
module attributes {stable_mosaic.version = 11 : i64} {
  func.func @_conv_stats_kernel(%arg0: i32, %arg1: memref<128x128xbf16, #tpu.memory_space<vmem>>, %arg2: memref<128x128xbf16, #tpu.memory_space<vmem>>, %arg3: memref<128x128xf32, #tpu.memory_space<vmem>>, %arg4: memref<2x128xf32, #tpu.memory_space<vmem>>) attributes {dimension_semantics = [#tpu.dimension_semantics<arbitrary>], iteration_bounds = array<i64: 1>, scalar_prefetch = 0 : i64, scratch_operands = 0 : i64, tpu.core_type = #tpu.core_type<tc>, window_params = [{transform_indices = @transform_0, window_bounds = array<i64: 128, 128>}, {pipeline_mode = #tpu.pipeline_mode<synchronous>, transform_indices = @transform_1, window_bounds = array<i64: 128, 128>}, {transform_indices = @transform_2, window_bounds = array<i64: 128, 128>}, {pipeline_mode = #tpu.pipeline_mode<synchronous>, transform_indices = @transform_3, window_bounds = array<i64: 2, 128>}]} {
    %c0_i32 = arith.constant 0 : i32
    %0 = arith.cmpi eq, %arg0, %c0_i32 : i32
    %1 = arith.extui %0 : i1 to i32
    %c0_i32_0 = arith.constant 0 : i32
    %2 = arith.cmpi ne, %1, %c0_i32_0 : i32
    scf.if %2 {
      %cst_15 = arith.constant 0.000000e+00 : f32
      %18 = vector.broadcast %cst_15 : f32 to vector<2x128xf32>
      %c0_16 = arith.constant 0 : index
      %c0_17 = arith.constant 0 : index
      %19 = vector.load %arg4[%c0_16, %c0_17] : memref<2x128xf32, #tpu.memory_space<vmem>>, vector<2x128xf32>
      tpu.vector_store %arg4[%c0_16, %c0_17], %18 {strides = array<i32>} : memref<2x128xf32, #tpu.memory_space<vmem>>, vector<2x128xf32>,
    } else {
    }
    %c0 = arith.constant 0 : index
    %c0_1 = arith.constant 0 : index
    %3 = vector.load %arg1[%c0, %c0_1] : memref<128x128xbf16, #tpu.memory_space<vmem>>, vector<128x128xbf16>
    %c0_2 = arith.constant 0 : index
    %c0_3 = arith.constant 0 : index
    %4 = vector.load %arg2[%c0_2, %c0_3] : memref<128x128xbf16, #tpu.memory_space<vmem>>, vector<128x128xbf16>
    %cst = arith.constant dense<0.000000e+00> : vector<128x128xf32>
    %5 = tpu.matmul %3, %4, %cst {dimension_numbers = #tpu.dot_dimension_numbers<[1], [0], [0], [1], [0, 0, 1, 1], [], []>} : vector<128x128xbf16>, vector<128x128xbf16>, vector<128x128xf32> -> vector<128x128xf32>
    %c0_4 = arith.constant 0 : index
    %c0_5 = arith.constant 0 : index
    %6 = vector.load %arg3[%c0_4, %c0_5] : memref<128x128xf32, #tpu.memory_space<vmem>>, vector<128x128xf32>
    tpu.vector_store %arg3[%c0_4, %c0_5], %5 {strides = array<i32>} : memref<128x128xf32, #tpu.memory_space<vmem>>, vector<128x128xf32>,
    %c0_6 = arith.constant 0 : index
    %c0_7 = arith.constant 0 : index
    %7 = vector.load %arg4[%c0_6, %c0_7] : memref<2x128xf32, #tpu.memory_space<vmem>>, vector<1x128xf32>
    %cst_8 = arith.constant dense<0.000000e+00> : vector<128xf32>
    %8 = vector.multi_reduction <add>, %5, %cst_8 [0] : vector<128x128xf32> to vector<128xf32>
    %9 = vector.shape_cast %8 : vector<128xf32> to vector<1x128xf32>
    %10 = arith.addf %7, %9 : vector<1x128xf32>
    %c0_9 = arith.constant 0 : index
    %c0_10 = arith.constant 0 : index
    %11 = vector.load %arg4[%c0_9, %c0_10] : memref<2x128xf32, #tpu.memory_space<vmem>>, vector<1x128xf32>
    tpu.vector_store %arg4[%c0_9, %c0_10], %10 {strides = array<i32>} : memref<2x128xf32, #tpu.memory_space<vmem>>, vector<1x128xf32>,
    %c1 = arith.constant 1 : index
    %c0_11 = arith.constant 0 : index
    %12 = vector.load %arg4[%c1, %c0_11] : memref<2x128xf32, #tpu.memory_space<vmem>>, vector<1x128xf32>
    %13 = arith.mulf %5, %5 : vector<128x128xf32>
    %cst_12 = arith.constant dense<0.000000e+00> : vector<128xf32>
    %14 = vector.multi_reduction <add>, %13, %cst_12 [0] : vector<128x128xf32> to vector<128xf32>
    %15 = vector.shape_cast %14 : vector<128xf32> to vector<1x128xf32>
    %16 = arith.addf %12, %15 : vector<1x128xf32>
    %c1_13 = arith.constant 1 : index
    %c0_14 = arith.constant 0 : index
    %17 = vector.load %arg4[%c1_13, %c0_14] : memref<2x128xf32, #tpu.memory_space<vmem>>, vector<1x128xf32>
    tpu.vector_store %arg4[%c1_13, %c0_14], %16 {strides = array<i32>} : memref<2x128xf32, #tpu.memory_space<vmem>>, vector<1x128xf32>,
    return
  }
  func.func @transform_0(%arg0: i32) -> (i32, i32) {
    %c0_i32 = arith.constant 0 : i32
    %c0_i32_0 = arith.constant 0 : i32
    return %arg0, %c0_i32 : i32, i32
  }
  func.func @transform_1(%arg0: i32) -> (i32, i32) {
    %c0_i32 = arith.constant 0 : i32
    %c0_i32_0 = arith.constant 0 : i32
    %c0_i32_1 = arith.constant 0 : i32
    return %c0_i32, %c0_i32_0 : i32, i32
  }
  func.func @transform_2(%arg0: i32) -> (i32, i32) {
    %c0_i32 = arith.constant 0 : i32
    %c0_i32_0 = arith.constant 0 : i32
    return %arg0, %c0_i32 : i32, i32
  }
  func.func @transform_3(%arg0: i32) -> (i32, i32) {
    %c0_i32 = arith.constant 0 : i32
    %c0_i32_0 = arith.constant 0 : i32
    %c0_i32_1 = arith.constant 0 : i32
    return %c0_i32, %c0_i32_0 : i32, i32
  }
}

module attributes {stable_mosaic.version = 11 : i64} {
  func.func @_bn_apply_kernel(%arg0: i32, %arg1: memref<128x128xf32, #tpu.memory_space<vmem>>, %arg2: memref<2x128xf32, #tpu.memory_space<vmem>>, %arg3: memref<2x128xf32, #tpu.memory_space<vmem>>, %arg4: memref<128x128xf32, #tpu.memory_space<vmem>>) attributes {dimension_semantics = [#tpu.dimension_semantics<parallel>], iteration_bounds = array<i64: 1>, scalar_prefetch = 0 : i64, scratch_operands = 0 : i64, tpu.core_type = #tpu.core_type<tc>, window_params = [{transform_indices = @transform_0, window_bounds = array<i64: 128, 128>}, {pipeline_mode = #tpu.pipeline_mode<synchronous>, transform_indices = @transform_1, window_bounds = array<i64: 2, 128>}, {pipeline_mode = #tpu.pipeline_mode<synchronous>, transform_indices = @transform_2, window_bounds = array<i64: 2, 128>}, {transform_indices = @transform_3, window_bounds = array<i64: 128, 128>}]} {
    %c0 = arith.constant 0 : index
    %c0_0 = arith.constant 0 : index
    %0 = vector.load %arg1[%c0, %c0_0] : memref<128x128xf32, #tpu.memory_space<vmem>>, vector<128x128xf32>
    %c0_1 = arith.constant 0 : index
    %c0_2 = arith.constant 0 : index
    %1 = vector.load %arg2[%c0_1, %c0_2] : memref<2x128xf32, #tpu.memory_space<vmem>>, vector<2x128xf32>
    %c0_3 = arith.constant 0 : index
    %c0_4 = arith.constant 0 : index
    %2 = vector.load %arg3[%c0_3, %c0_4] : memref<2x128xf32, #tpu.memory_space<vmem>>, vector<2x128xf32>
    %3 = vector.extract_strided_slice %1 {offsets = [0, 0], sizes = [1, 128], strides = [1, 1]} : vector<2x128xf32> to vector<1x128xf32>
    %cst = arith.constant 7.812500e-03 : f32
    %4 = vector.broadcast %cst : f32 to vector<1x128xf32>
    %5 = arith.mulf %3, %4 : vector<1x128xf32>
    %6 = vector.extract_strided_slice %1 {offsets = [1, 0], sizes = [1, 128], strides = [1, 1]} : vector<2x128xf32> to vector<1x128xf32>
    %cst_5 = arith.constant 7.812500e-03 : f32
    %7 = vector.broadcast %cst_5 : f32 to vector<1x128xf32>
    %8 = arith.mulf %6, %7 : vector<1x128xf32>
    %9 = arith.mulf %5, %5 : vector<1x128xf32>
    %10 = arith.subf %8, %9 : vector<1x128xf32>
    %cst_6 = arith.constant 0.000000e+00 : f32
    %11 = vector.broadcast %cst_6 : f32 to vector<1x128xf32>
    %12 = arith.maximumf %10, %11 : vector<1x128xf32>
    %13 = vector.extract_strided_slice %2 {offsets = [0, 0], sizes = [1, 128], strides = [1, 1]} : vector<2x128xf32> to vector<1x128xf32>
    %cst_7 = arith.constant 9.99999974E-6 : f32
    %14 = vector.broadcast %cst_7 : f32 to vector<1x128xf32>
    %15 = arith.addf %12, %14 : vector<1x128xf32>
    %16 = math.rsqrt %15 : vector<1x128xf32>
    %17 = arith.mulf %13, %16 : vector<1x128xf32>
    %18 = vector.extract_strided_slice %2 {offsets = [1, 0], sizes = [1, 128], strides = [1, 1]} : vector<2x128xf32> to vector<1x128xf32>
    %19 = arith.mulf %5, %17 : vector<1x128xf32>
    %20 = arith.subf %18, %19 : vector<1x128xf32>
    %21 = vector.broadcast %17 : vector<1x128xf32> to vector<128x128xf32>
    %22 = arith.mulf %0, %21 : vector<128x128xf32>
    %23 = vector.broadcast %20 : vector<1x128xf32> to vector<128x128xf32>
    %24 = arith.addf %22, %23 : vector<128x128xf32>
    %cst_8 = arith.constant 0.000000e+00 : f32
    %25 = vector.broadcast %cst_8 : f32 to vector<128x128xf32>
    %26 = arith.maximumf %24, %25 : vector<128x128xf32>
    %c0_9 = arith.constant 0 : index
    %c0_10 = arith.constant 0 : index
    %27 = vector.load %arg4[%c0_9, %c0_10] : memref<128x128xf32, #tpu.memory_space<vmem>>, vector<128x128xf32>
    tpu.vector_store %arg4[%c0_9, %c0_10], %26 {strides = array<i32>} : memref<128x128xf32, #tpu.memory_space<vmem>>, vector<128x128xf32>,
    return
  }
  func.func @transform_0(%arg0: i32) -> (i32, i32) {
    %c0_i32 = arith.constant 0 : i32
    %c0_i32_0 = arith.constant 0 : i32
    return %arg0, %c0_i32 : i32, i32
  }
  func.func @transform_1(%arg0: i32) -> (i32, i32) {
    %c0_i32 = arith.constant 0 : i32
    %c0_i32_0 = arith.constant 0 : i32
    %c0_i32_1 = arith.constant 0 : i32
    return %c0_i32, %c0_i32_0 : i32, i32
  }
  func.func @transform_2(%arg0: i32) -> (i32, i32) {
    %c0_i32 = arith.constant 0 : i32
    %c0_i32_0 = arith.constant 0 : i32
    %c0_i32_1 = arith.constant 0 : i32
    return %c0_i32, %c0_i32_0 : i32, i32
  }
  func.func @transform_3(%arg0: i32) -> (i32, i32) {
    %c0_i32 = arith.constant 0 : i32
    %c0_i32_0 = arith.constant 0 : i32
    return %arg0, %c0_i32 : i32, i32
  }
}

module attributes {stable_mosaic.version = 11 : i64} {
  func.func @_bn_apply_kernel(%arg0: i32, %arg1: memref<128x128xf32, #tpu.memory_space<vmem>>, %arg2: memref<2x128xf32, #tpu.memory_space<vmem>>, %arg3: memref<2x128xf32, #tpu.memory_space<vmem>>, %arg4: memref<128x128xf32, #tpu.memory_space<vmem>>, %arg5: memref<2x128xf32, #tpu.memory_space<vmem>>, %arg6: memref<2x128xf32, #tpu.memory_space<vmem>>, %arg7: memref<128x128xf32, #tpu.memory_space<vmem>>) attributes {dimension_semantics = [#tpu.dimension_semantics<parallel>], iteration_bounds = array<i64: 1>, scalar_prefetch = 0 : i64, scratch_operands = 0 : i64, tpu.core_type = #tpu.core_type<tc>, window_params = [{transform_indices = @transform_0, window_bounds = array<i64: 128, 128>}, {pipeline_mode = #tpu.pipeline_mode<synchronous>, transform_indices = @transform_1, window_bounds = array<i64: 2, 128>}, {pipeline_mode = #tpu.pipeline_mode<synchronous>, transform_indices = @transform_2, window_bounds = array<i64: 2, 128>}, {transform_indices = @transform_3, window_bounds = array<i64: 128, 128>}, {pipeline_mode = #tpu.pipeline_mode<synchronous>, transform_indices = @transform_4, window_bounds = array<i64: 2, 128>}, {pipeline_mode = #tpu.pipeline_mode<synchronous>, transform_indices = @transform_5, window_bounds = array<i64: 2, 128>}, {transform_indices = @transform_6, window_bounds = array<i64: 128, 128>}]} {
    %c0 = arith.constant 0 : index
    %c0_0 = arith.constant 0 : index
    %0 = vector.load %arg1[%c0, %c0_0] : memref<128x128xf32, #tpu.memory_space<vmem>>, vector<128x128xf32>
    %c0_1 = arith.constant 0 : index
    %c0_2 = arith.constant 0 : index
    %1 = vector.load %arg2[%c0_1, %c0_2] : memref<2x128xf32, #tpu.memory_space<vmem>>, vector<2x128xf32>
    %c0_3 = arith.constant 0 : index
    %c0_4 = arith.constant 0 : index
    %2 = vector.load %arg3[%c0_3, %c0_4] : memref<2x128xf32, #tpu.memory_space<vmem>>, vector<2x128xf32>
    %3 = vector.extract_strided_slice %1 {offsets = [0, 0], sizes = [1, 128], strides = [1, 1]} : vector<2x128xf32> to vector<1x128xf32>
    %cst = arith.constant 7.812500e-03 : f32
    %4 = vector.broadcast %cst : f32 to vector<1x128xf32>
    %5 = arith.mulf %3, %4 : vector<1x128xf32>
    %6 = vector.extract_strided_slice %1 {offsets = [1, 0], sizes = [1, 128], strides = [1, 1]} : vector<2x128xf32> to vector<1x128xf32>
    %cst_5 = arith.constant 7.812500e-03 : f32
    %7 = vector.broadcast %cst_5 : f32 to vector<1x128xf32>
    %8 = arith.mulf %6, %7 : vector<1x128xf32>
    %9 = arith.mulf %5, %5 : vector<1x128xf32>
    %10 = arith.subf %8, %9 : vector<1x128xf32>
    %cst_6 = arith.constant 0.000000e+00 : f32
    %11 = vector.broadcast %cst_6 : f32 to vector<1x128xf32>
    %12 = arith.maximumf %10, %11 : vector<1x128xf32>
    %13 = vector.extract_strided_slice %2 {offsets = [0, 0], sizes = [1, 128], strides = [1, 1]} : vector<2x128xf32> to vector<1x128xf32>
    %cst_7 = arith.constant 9.99999974E-6 : f32
    %14 = vector.broadcast %cst_7 : f32 to vector<1x128xf32>
    %15 = arith.addf %12, %14 : vector<1x128xf32>
    %16 = math.rsqrt %15 : vector<1x128xf32>
    %17 = arith.mulf %13, %16 : vector<1x128xf32>
    %18 = vector.extract_strided_slice %2 {offsets = [1, 0], sizes = [1, 128], strides = [1, 1]} : vector<2x128xf32> to vector<1x128xf32>
    %19 = arith.mulf %5, %17 : vector<1x128xf32>
    %20 = arith.subf %18, %19 : vector<1x128xf32>
    %21 = vector.broadcast %17 : vector<1x128xf32> to vector<128x128xf32>
    %22 = arith.mulf %0, %21 : vector<128x128xf32>
    %23 = vector.broadcast %20 : vector<1x128xf32> to vector<128x128xf32>
    %24 = arith.addf %22, %23 : vector<128x128xf32>
    %c0_8 = arith.constant 0 : index
    %c0_9 = arith.constant 0 : index
    %25 = vector.load %arg4[%c0_8, %c0_9] : memref<128x128xf32, #tpu.memory_space<vmem>>, vector<128x128xf32>
    %c0_10 = arith.constant 0 : index
    %c0_11 = arith.constant 0 : index
    %26 = vector.load %arg5[%c0_10, %c0_11] : memref<2x128xf32, #tpu.memory_space<vmem>>, vector<2x128xf32>
    %c0_12 = arith.constant 0 : index
    %c0_13 = arith.constant 0 : index
    %27 = vector.load %arg6[%c0_12, %c0_13] : memref<2x128xf32, #tpu.memory_space<vmem>>, vector<2x128xf32>
    %28 = vector.extract_strided_slice %26 {offsets = [0, 0], sizes = [1, 128], strides = [1, 1]} : vector<2x128xf32> to vector<1x128xf32>
    %cst_14 = arith.constant 7.812500e-03 : f32
    %29 = vector.broadcast %cst_14 : f32 to vector<1x128xf32>
    %30 = arith.mulf %28, %29 : vector<1x128xf32>
    %31 = vector.extract_strided_slice %26 {offsets = [1, 0], sizes = [1, 128], strides = [1, 1]} : vector<2x128xf32> to vector<1x128xf32>
    %cst_15 = arith.constant 7.812500e-03 : f32
    %32 = vector.broadcast %cst_15 : f32 to vector<1x128xf32>
    %33 = arith.mulf %31, %32 : vector<1x128xf32>
    %34 = arith.mulf %30, %30 : vector<1x128xf32>
    %35 = arith.subf %33, %34 : vector<1x128xf32>
    %cst_16 = arith.constant 0.000000e+00 : f32
    %36 = vector.broadcast %cst_16 : f32 to vector<1x128xf32>
    %37 = arith.maximumf %35, %36 : vector<1x128xf32>
    %38 = vector.extract_strided_slice %27 {offsets = [0, 0], sizes = [1, 128], strides = [1, 1]} : vector<2x128xf32> to vector<1x128xf32>
    %cst_17 = arith.constant 9.99999974E-6 : f32
    %39 = vector.broadcast %cst_17 : f32 to vector<1x128xf32>
    %40 = arith.addf %37, %39 : vector<1x128xf32>
    %41 = math.rsqrt %40 : vector<1x128xf32>
    %42 = arith.mulf %38, %41 : vector<1x128xf32>
    %43 = vector.extract_strided_slice %27 {offsets = [1, 0], sizes = [1, 128], strides = [1, 1]} : vector<2x128xf32> to vector<1x128xf32>
    %44 = arith.mulf %30, %42 : vector<1x128xf32>
    %45 = arith.subf %43, %44 : vector<1x128xf32>
    %46 = vector.broadcast %42 : vector<1x128xf32> to vector<128x128xf32>
    %47 = arith.mulf %25, %46 : vector<128x128xf32>
    %48 = vector.broadcast %45 : vector<1x128xf32> to vector<128x128xf32>
    %49 = arith.addf %47, %48 : vector<128x128xf32>
    %50 = arith.addf %24, %49 : vector<128x128xf32>
    %cst_18 = arith.constant 0.000000e+00 : f32
    %51 = vector.broadcast %cst_18 : f32 to vector<128x128xf32>
    %52 = arith.maximumf %50, %51 : vector<128x128xf32>
    %c0_19 = arith.constant 0 : index
    %c0_20 = arith.constant 0 : index
    %53 = vector.load %arg7[%c0_19, %c0_20] : memref<128x128xf32, #tpu.memory_space<vmem>>, vector<128x128xf32>
    tpu.vector_store %arg7[%c0_19, %c0_20], %52 {strides = array<i32>} : memref<128x128xf32, #tpu.memory_space<vmem>>, vector<128x128xf32>,
    return
  }
  func.func @transform_0(%arg0: i32) -> (i32, i32) {
    %c0_i32 = arith.constant 0 : i32
    %c0_i32_0 = arith.constant 0 : i32
    return %arg0, %c0_i32 : i32, i32
  }
  func.func @transform_1(%arg0: i32) -> (i32, i32) {
    %c0_i32 = arith.constant 0 : i32
    %c0_i32_0 = arith.constant 0 : i32
    %c0_i32_1 = arith.constant 0 : i32
    return %c0_i32, %c0_i32_0 : i32, i32
  }
  func.func @transform_2(%arg0: i32) -> (i32, i32) {
    %c0_i32 = arith.constant 0 : i32
    %c0_i32_0 = arith.constant 0 : i32
    %c0_i32_1 = arith.constant 0 : i32
    return %c0_i32, %c0_i32_0 : i32, i32
  }
  func.func @transform_3(%arg0: i32) -> (i32, i32) {
    %c0_i32 = arith.constant 0 : i32
    %c0_i32_0 = arith.constant 0 : i32
    return %arg0, %c0_i32 : i32, i32
  }
  func.func @transform_4(%arg0: i32) -> (i32, i32) {
    %c0_i32 = arith.constant 0 : i32
    %c0_i32_0 = arith.constant 0 : i32
    %c0_i32_1 = arith.constant 0 : i32
    return %c0_i32, %c0_i32_0 : i32, i32
  }
  func.func @transform_5(%arg0: i32) -> (i32, i32) {
    %c0_i32 = arith.constant 0 : i32
    %c0_i32_0 = arith.constant 0 : i32
    %c0_i32_1 = arith.constant 0 : i32
    return %c0_i32, %c0_i32_0 : i32, i32
  }
  func.func @transform_6(%arg0: i32) -> (i32, i32) {
    %c0_i32 = arith.constant 0 : i32
    %c0_i32_0 = arith.constant 0 : i32
    return %arg0, %c0_i32 : i32, i32
  }
}

</mosaic_0001>

<bundles_post_ra>
// kernel: basic_block_forward.6
= control target key start
LH: loop header
LB: loop body
LE: loop exit
PB: predicated region body
PF: predicated region fallthrough
CT: control target
= control target key end

     0   :  { %v50_v7 = vlaneseq  ;;  %s250_s1 = inlined_call_operand.vmem [shape: f32[2,128], index: 1, kind: input, shape index: {}]   ;;  %s251_s2 = inlined_call_operand.vmem [shape: f32[2,128], index: 2, kind: input, shape index: {}]   ;;  %s252_s0 = inlined_call_operand.vmem [shape: f32[128,128], index: 0, kind: input, shape index: {}]   ;;  %s253_s3 = inlined_call_operand.vmem [shape: f32[128,128], index: 3, kind: output, shape index: {}]  }
   0x1   :  { %v30_v0 = vld [vmem:[%s250_s1] sm:$0x3]  ;;  %v15_v17 = vld [vmem:[%s252_s0 + $0x8] sm:$0xff]  ;;  %v16_v18 = vld [vmem:[%s252_s0 + $0x10] sm:$0xff] }
   0x2   :  { %v32_v1 = vmul.f32 0.0078125, %v30_v0  ;;  %v51_v8 = vshrl.u32 %v50_v7, 7  ;;  %v31_v10 = vld [vmem:[%s251_s2] sm:$0x3]  ;;  %v17_v19 = vld [vmem:[%s252_s0 + $0x18] sm:$0xff]  ;;  %v19_v21 = vld [vmem:[%s252_s0 + $0x28] sm:$0xff] }
   0x3   :  { %v14_v14 = vld [vmem:[%s252_s0] sm:$0xff]  ;;  %v20_v22 = vld [vmem:[%s252_s0 + $0x30] sm:$0xff]  ;;  %v21_v25 = vld [vmem:[%s252_s0 + $0x38] sm:$0xff] }
   0x4   :  { %v33_v2 = vmul.f32 %v32_v1, %v32_v1  ;;  %v52_v12 = vsub.s32 0, %v51_v8  ;;  %v18_v20 = vld [vmem:[%s252_s0 + $0x20] sm:$0xff]  ;;  %v72_v24 = vsub.s32 1, %v51_v8  ;;  %v23_v27 = vld [vmem:[%s252_s0 + $0x48] sm:$0xff]  ;;  %v24_v30 = vld [vmem:[%s252_s0 + $0x50] sm:$0xff] }
   0x5   :  { %v22_v26 = vld [vmem:[%s252_s0 + $0x40] sm:$0xff]  ;;  %v25_v31 = vld [vmem:[%s252_s0 + $0x58] sm:$0xff]  ;;  %v27_v37 = vld [vmem:[%s252_s0 + $0x68] sm:$0xff] }
   0x6   :  { %v35_v3 = vrot.slane %v33_v2, 7  ;;  %v26_v32 = vld [vmem:[%s252_s0 + $0x60] sm:$0xff]  ;;  %v28_v38 = vld [vmem:[%s252_s0 + $0x70] sm:$0xff]  ;;  %v29_v39 = vld [vmem:[%s252_s0 + $0x78] sm:$0xff] }
   0x8   :  { %v37_v4 = vsub.f32 %v32_v1, %v35_v3 }
   0xa   :  { %v38_v5 = vmax.f32 %v37_v4, 0.0 }
   0xc   :  { %v39_v6 = vadd.f32 1e-05, %v38_v5 }
   0xe   :  { %126 = vrsqrt.f32 %v39_v6 }
  0x18   :  { %v127_v9 = vpop.eup %126 }
  0x19   :  { %v42_v11 = vrot.slane %v127_v9, 1 }
  0x1b   :  { %v44_v13 = vmul.f32 %v42_v11, %v31_v10 }
  0x1d   :  { %v45_v15 = vmul.f32 %v44_v13, %v32_v1  ;;  %v53_v16 = vrot.slane %v44_v13, %v52_v12 }
  0x1f   :  { %v47_v23 = vrot.slane %v45_v15, 7  ;;  %v54_v28 = vmul.f32 %v53_v16, %v14_v14  ;;  %v55_v29 = vmul.f32 %v53_v16, %v15_v17  ;;  %v56_v34 = vmul.f32 %v53_v16, %v16_v18 }
  0x20   :  { %v57_v35 = vmul.f32 %v53_v16, %v17_v19  ;;  %v58_v36 = vmul.f32 %v53_v16, %v18_v20  ;;  %v59_v40 = vmul.f32 %v53_v16, %v19_v21  ;;  %v60_v41 = vmul.f32 %v53_v16, %v20_v22 }
  0x21   :  { %v49_v33 = vsub.f32 %v31_v10, %v47_v23  ;;  %v61_v42 = vmul.f32 %v53_v16, %v21_v25  ;;  %v62_v43 = vmul.f32 %v53_v16, %v22_v26  ;;  %v63_v45 = vmul.f32 %v53_v16, %v23_v27 }
  0x22   :  { %v64_v46 = vmul.f32 %v53_v16, %v24_v30  ;;  %v65_v47 = vmul.f32 %v53_v16, %v25_v31  ;;  %v66_v48 = vmul.f32 %v53_v16, %v26_v32  ;;  %v67_v49 = vmul.f32 %v53_v16, %v27_v37 }
  0x23   :  { %v73_v44 = vrot.slane %v49_v33, %v72_v24  ;;  %v68_v50 = vmul.f32 %v53_v16, %v28_v38  ;;  %v69_v51 = vmul.f32 %v53_v16, %v29_v39 }
  0x25   :  { %v74_v52 = vadd.f32 %v73_v44, %v54_v28  ;;  %v75_v53 = vadd.f32 %v73_v44, %v55_v29  ;;  %v76_v54 = vadd.f32 %v73_v44, %v56_v34  ;;  %v77_v55 = vadd.f32 %v73_v44, %v57_v35 }
  0x26   :  { %v78_v56 = vadd.f32 %v73_v44, %v58_v36  ;;  %v79_v57 = vadd.f32 %v73_v44, %v59_v40  ;;  %v80_v58 = vadd.f32 %v73_v44, %v60_v41  ;;  %v81_v59 = vadd.f32 %v73_v44, %v61_v42 }
  0x27   :  { %v90_v60 = vmax.f32 %v74_v52, 0.0  ;;  %v91_v61 = vmax.f32 %v75_v53, 0.0  ;;  %v92_v62 = vmax.f32 %v76_v54, 0.0  ;;  %v93_v63 = vmax.f32 %v77_v55, 0.0 }
  0x28   :  { %v94_v0 = vmax.f32 %v78_v56, 0.0  ;;  %v95_v1 = vmax.f32 %v79_v57, 0.0  ;;  %v96_v2 = vmax.f32 %v80_v58, 0.0  ;;  %v97_v3 = vmax.f32 %v81_v59, 0.0 }
  0x29   :  { %106 = vst [vmem:[%s253_s3] sm:$0xff] %v90_v60  ;;  %107 = vst [vmem:[%s253_s3 + $0x8] sm:$0xff] %v91_v61  ;;  %v82_v4 = vadd.f32 %v73_v44, %v62_v43  ;;  %v83_v5 = vadd.f32 %v73_v44, %v63_v45  ;;  %v84_v6 = vadd.f32 %v73_v44, %v64_v46 }
  0x2a   :  { %108 = vst [vmem:[%s253_s3 + $0x10] sm:$0xff] %v92_v62  ;;  %109 = vst [vmem:[%s253_s3 + $0x18] sm:$0xff] %v93_v63  ;;  %v85_v7 = vadd.f32 %v73_v44, %v65_v47  ;;  %v86_v8 = vadd.f32 %v73_v44, %v66_v48  ;;  %v87_v9 = vadd.f32 %v73_v44, %v67_v49 }
  0x2b   :  { %110 = vst [vmem:[%s253_s3 + $0x20] sm:$0xff] %v94_v0  ;;  %111 = vst [vmem:[%s253_s3 + $0x28] sm:$0xff] %v95_v1  ;;  %v88_v10 = vadd.f32 %v73_v44, %v68_v50  ;;  %v89_v11 = vadd.f32 %v73_v44, %v69_v51  ;;  %v98_v12 = vmax.f32 %v82_v4, 0.0  ;;  %v99_v13 = vmax.f32 %v83_v5, 0.0 }
  0x2c   :  { %112 = vst [vmem:[%s253_s3 + $0x30] sm:$0xff] %v96_v2  ;;  %113 = vst [vmem:[%s253_s3 + $0x38] sm:$0xff] %v97_v3  ;;  %v100_v14 = vmax.f32 %v84_v6, 0.0  ;;  %v101_v15 = vmax.f32 %v85_v7, 0.0  ;;  %v102_v16 = vmax.f32 %v86_v8, 0.0  ;;  %v103_v17 = vmax.f32 %v87_v9, 0.0 }
  0x2d   :  { %v104_v18 = vmax.f32 %v88_v10, 0.0  ;;  %v105_v19 = vmax.f32 %v89_v11, 0.0  ;;  %114 = vst [vmem:[%s253_s3 + $0x40] sm:$0xff] %v98_v12  ;;  %115 = vst [vmem:[%s253_s3 + $0x48] sm:$0xff] %v99_v13 }
  0x2e   :  { %116 = vst [vmem:[%s253_s3 + $0x50] sm:$0xff] %v100_v14  ;;  %117 = vst [vmem:[%s253_s3 + $0x58] sm:$0xff] %v101_v15 }
  0x2f   :  { %118 = vst [vmem:[%s253_s3 + $0x60] sm:$0xff] %v102_v16  ;;  %119 = vst [vmem:[%s253_s3 + $0x68] sm:$0xff] %v103_v17 }
  0x30   :  { %120 = vst [vmem:[%s253_s3 + $0x70] sm:$0xff] %v104_v18  ;;  %121 = vst [vmem:[%s253_s3 + $0x78] sm:$0xff] %v105_v19 }

// kernel: basic_block_forward.5
= control target key start
LH: loop header
LB: loop body
LE: loop exit
PB: predicated region body
PF: predicated region fallthrough
CT: control target
= control target key end

     0   :  { %v429_v16 = vmov 0.0   ;;  %s561_s1 = inlined_call_operand.vmem [shape: bf16[128,128], index: 1, kind: input, shape index: {}]   ;;  %s562_s0 = inlined_call_operand.vmem [shape: bf16[128,128], index: 0, kind: input, shape index: {}]   ;;  %s563_s3 = inlined_call_operand.vmem [shape: f32[2,128], index: 3, kind: output, shape index: {1}]   ;;  %s564_s2 = inlined_call_operand.vmem [shape: f32[128,128], index: 2, kind: output, shape index: {0}]  }
   0x1   :  { %v413_v0 = vld [vmem:[%s561_s1] sm:$0xff]   ;;  %v414_v1 = vld [vmem:[%s561_s1 + $0x8] sm:$0xff]   ;;  %v415_v2 = vld [vmem:[%s561_s1 + $0x10] sm:$0xff]   ;;  %18 = vst [vmem:[%s563_s3] sm:$0x3] %v429_v16 }
   0x2   :  { %364 = vmatprep.subr.bf16.mxu0 %v413_v0  ;;  %396 = vmatprep.subr.bf16.mxu1 %v413_v0  ;;  %v416_v3 = vld [vmem:[%s561_s1 + $0x18] sm:$0xff]   ;;  %v421_v4 = vld [vmem:[%s562_s0] sm:$0xff]   ;;  %v418_v7 = vld [vmem:[%s561_s1 + $0x28] sm:$0xff]  }
   0x3   :  { %365 = vmatpush3.bf16.msra.mxu0 %v413_v0  ;;  %404 = vmatpush3.bf16.msra.mxu1 %v413_v0  ;;  %v417_v5 = vld [vmem:[%s561_s1 + $0x20] sm:$0xff]   ;;  %v419_v8 = vld [vmem:[%s561_s1 + $0x30] sm:$0xff]   ;;  %v420_v9 = vld [vmem:[%s561_s1 + $0x38] sm:$0xff]  }
   0x4   :  { %366 = vmatprep.subr.bf16.mxu0 %v414_v1  ;;  %397 = vmatprep.subr.bf16.mxu1 %v414_v1  ;;  %v425_v6 = vld [vmem:[%s562_s0 + $0x20] sm:$0xff]   ;;  %v422_v10 = vld [vmem:[%s562_s0 + $0x8] sm:$0xff]   ;;  %v423_v12 = vld [vmem:[%s562_s0 + $0x10] sm:$0xff]  }
   0x5   :  { %380 = vmatprep.mubr.bf16.mxu0 %v421_v4  ;;  %388 = vmatprep.mubr.bf16.mxu1 %v425_v6  ;;  %v426_v11 = vld [vmem:[%s562_s0 + $0x28] sm:$0xff]   ;;  %v427_v13 = vld [vmem:[%s562_s0 + $0x30] sm:$0xff]   ;;  %v424_v14 = vld [vmem:[%s562_s0 + $0x18] sm:$0xff]  }
   0x6   :  { %v428_v15 = vld [vmem:[%s562_s0 + $0x38] sm:$0xff]  }
   0x7   :  { %367 = vmatpush3.bf16.msra.mxu0 %v414_v1  ;;  %405 = vmatpush3.bf16.msra.mxu1 %v414_v1 }
   0x8   :  { %368 = vmatprep.subr.bf16.mxu0 %v415_v2  ;;  %398 = vmatprep.subr.bf16.mxu1 %v415_v2 }
   0xb   :  { %369 = vmatpush3.bf16.msra.mxu0 %v415_v2  ;;  %406 = vmatpush3.bf16.msra.mxu1 %v415_v2 }
   0xc   :  { %370 = vmatprep.subr.bf16.mxu0 %v416_v3  ;;  %399 = vmatprep.subr.bf16.mxu1 %v416_v3 }
   0xf   :  { %371 = vmatpush3.bf16.msra.mxu0 %v416_v3  ;;  %407 = vmatpush3.bf16.msra.mxu1 %v416_v3 }
  0x10   :  { %372 = vmatprep.subr.bf16.mxu0 %v417_v5  ;;  %400 = vmatprep.subr.bf16.mxu1 %v417_v5 }
  0x13   :  { %373 = vmatpush3.bf16.msra.mxu0 %v417_v5  ;;  %408 = vmatpush3.bf16.msra.mxu1 %v417_v5 }
  0x14   :  { %374 = vmatprep.subr.bf16.mxu0 %v418_v7  ;;  %401 = vmatprep.subr.bf16.mxu1 %v418_v7 }
  0x17   :  { %375 = vmatpush3.bf16.msra.mxu0 %v418_v7  ;;  %409 = vmatpush3.bf16.msra.mxu1 %v418_v7 }
  0x18   :  { %376 = vmatprep.subr.bf16.mxu0 %v419_v8  ;;  %402 = vmatprep.subr.bf16.mxu1 %v419_v8 }
  0x1b   :  { %377 = vmatpush3.bf16.msra.mxu0 %v419_v8  ;;  %410 = vmatpush3.bf16.msra.mxu1 %v419_v8 }
  0x1c   :  { %378 = vmatprep.subr.bf16.mxu0 %v420_v9  ;;  %403 = vmatprep.subr.bf16.mxu1 %v420_v9 }
  0x1f   :  { %379 = vmatpush3.bf16.msra.mxu0 %v420_v9  ;;  %411 = vmatpush3.bf16.msra.mxu1 %v420_v9 }
  0x22   :  { %381 = vmatmul.mubr.bf16.vlgmr.msra.gmra.mrb[0].mxu0 %v422_v10  ;;  %389 = vmatmul.mubr.bf16.vlgmr.msra.gmra.mrb[0].mxu1 %v426_v11 }
  0x23   :  { %384 = vmatprep.mubr.bf16.mxu0 %v423_v12  ;;  %392 = vmatprep.mubr.bf16.mxu1 %v427_v13 }
  0x2a   :  { %385 = vmatmul.mubr.bf16.gmra.mrb[4].mxu0 %v424_v14  ;;  %393 = vmatmul.mubr.bf16.gmra.mrb[4].mxu1 %v428_v15 }
  0xf5   :  { %v382_v17 = vpop.f32.mrb[0].mxu0  ;;  %v390_v18 = vpop.f32.mrb[0].mxu1 }
  0xf6   :  { %246 = vst [vmem:[%s564_s2 + $0x10] sm:$0xff] %v382_v17  ;;  %v181_v19 = vpop.f32.mrb[1].mxu0  ;;  %254 = vst [vmem:[%s564_s2 + $0x50] sm:$0xff] %v390_v18  ;;  %v213_v20 = vpop.f32.mrb[1].mxu1  ;;  %v287_v28 = vmul.f32 %v382_v17, %v382_v17  ;;  %v295_v60 = vmul.f32 %v390_v18, %v390_v18 }
  0xf7   :  { %244 = vst [vmem:[%s564_s2] sm:$0xff] %v181_v19  ;;  %v383_v21 = vpop.f32.mrb[2].mxu0  ;;  %252 = vst [vmem:[%s564_s2 + $0x40] sm:$0xff] %v213_v20  ;;  %v391_v22 = vpop.f32.mrb[2].mxu1  ;;  %v285_v25 = vmul.f32 %v181_v19, %v181_v19  ;;  %v293_v54 = vmul.f32 %v213_v20, %v213_v20 }
  0xf8   :  { %247 = vst [vmem:[%s564_s2 + $0x18] sm:$0xff] %v383_v21  ;;  %v184_v23 = vpop.f32.mrb[3].mxu0  ;;  %255 = vst [vmem:[%s564_s2 + $0x58] sm:$0xff] %v391_v22  ;;  %v216_v24 = vpop.f32.mrb[3].mxu1  ;;  %v288_v31 = vmul.f32 %v383_v21, %v383_v21  ;;  %v296_v63 = vmul.f32 %v391_v22, %v391_v22 }
  0xf9   :  { %245 = vst [vmem:[%s564_s2 + $0x8] sm:$0xff] %v184_v23  ;;  %v261_v26 = vadd.f32 %v184_v23, %v181_v19  ;;  %v286_v27 = vmul.f32 %v184_v23, %v184_v23  ;;  %253 = vst [vmem:[%s564_s2 + $0x48] sm:$0xff] %v216_v24  ;;  %v294_v59 = vmul.f32 %v216_v24, %v216_v24 }
  0xfb   :  { %v262_v29 = vadd.f32 %v382_v17, %v261_v26  ;;  %v301_v30 = vadd.f32 %v286_v27, %v285_v25  ;;  %v284_v27 = vld [vmem:[%s563_s3 + $0x1] sm:$0x1] }
  0xfd   :  { %v302_v32 = vadd.f32 %v301_v30, %v287_v28  ;;  %v386_v33 = vpop.f32.mrb[4].mxu0  ;;  %v263_v34 = vadd.f32 %v383_v21, %v262_v29  ;;  %v394_v35 = vpop.f32.mrb[4].mxu1 }
  0xfe   :  { %250 = vst [vmem:[%s564_s2 + $0x30] sm:$0xff] %v386_v33  ;;  %v197_v36 = vpop.f32.mrb[5].mxu0  ;;  %258 = vst [vmem:[%s564_s2 + $0x70] sm:$0xff] %v394_v35  ;;  %v229_v37 = vpop.f32.mrb[5].mxu1  ;;  %v291_v48 = vmul.f32 %v386_v33, %v386_v33  ;;  %v299_v8 = vmul.f32 %v394_v35, %v394_v35 }
  0xff   :  { %248 = vst [vmem:[%s564_s2 + $0x20] sm:$0xff] %v197_v36  ;;  %v264_v38 = vadd.f32 %v263_v34, %v197_v36  ;;  %v289_v39 = vmul.f32 %v197_v36, %v197_v36  ;;  %v303_v40 = vadd.f32 %v302_v32, %v288_v31  ;;  %v387_v41 = vpop.f32.mrb[6].mxu0  ;;  %256 = vst [vmem:[%s564_s2 + $0x60] sm:$0xff] %v229_v37  ;;  %v395_v42 = vpop.f32.mrb[6].mxu1 }
 0x100   :  { %251 = vst [vmem:[%s564_s2 + $0x38] sm:$0xff] %v387_v41  ;;  %v200_v43 = vpop.f32.mrb[7].mxu0  ;;  %259 = vst [vmem:[%s564_s2 + $0x78] sm:$0xff] %v395_v42  ;;  %v232_v44 = vpop.f32.mrb[7].mxu1  ;;  %v292_v51 = vmul.f32 %v387_v41, %v387_v41  ;;  %v297_v2 = vmul.f32 %v229_v37, %v229_v37  ;;  %v300_v11 = vmul.f32 %v395_v42, %v395_v42 }
 0x101   :  { %v304_v45 = vadd.f32 %v303_v40, %v289_v39  ;;  %249 = vst [vmem:[%s564_s2 + $0x28] sm:$0xff] %v200_v43  ;;  %v265_v46 = vadd.f32 %v264_v38, %v200_v43  ;;  %v290_v47 = vmul.f32 %v200_v43, %v200_v43  ;;  %257 = vst [vmem:[%s564_s2 + $0x68] sm:$0xff] %v232_v44 }
 0x102   :  { %v298_v7 = vmul.f32 %v232_v44, %v232_v44 }
 0x103   :  { %v266_v49 = vadd.f32 %v386_v33, %v265_v46  ;;  %v305_v50 = vadd.f32 %v304_v45, %v290_v47 }
 0x105   :  { %v306_v52 = vadd.f32 %v305_v50, %v291_v48  ;;  %v267_v53 = vadd.f32 %v387_v41, %v266_v49 }
 0x107   :  { %v268_v55 = vadd.f32 %v267_v53, %v213_v20  ;;  %v307_v56 = vadd.f32 %v306_v52, %v292_v51 }
 0x109   :  { %v308_v57 = vadd.f32 %v307_v56, %v293_v54  ;;  %v269_v58 = vadd.f32 %v268_v55, %v216_v24  ;;  %v260_v24 = vld [vmem:[%s563_s3] sm:$0x1] }
 0x10b   :  { %v270_v61 = vadd.f32 %v390_v18, %v269_v58  ;;  %v309_v62 = vadd.f32 %v308_v57, %v294_v59 }
 0x10d   :  { %v310_v0 = vadd.f32 %v309_v62, %v295_v60  ;;  %v271_v1 = vadd.f32 %v391_v22, %v270_v61 }
 0x10f   :  { %v272_v3 = vadd.f32 %v271_v1, %v229_v37  ;;  %v311_v4 = vadd.f32 %v310_v0, %v296_v63 }
 0x111   :  { %v312_v5 = vadd.f32 %v311_v4, %v297_v2  ;;  %v273_v6 = vadd.f32 %v272_v3, %v232_v44 }
 0x113   :  { %v274_v9 = vadd.f32 %v394_v35, %v273_v6  ;;  %v313_v10 = vadd.f32 %v312_v5, %v298_v7 }
 0x115   :  { %v275_v12 = vadd.f32 %v395_v42, %v274_v9  ;;  %v314_v13 = vadd.f32 %v313_v10, %v299_v8 }
 0x117   :  { %v276_v14 = vrot.slane %v275_v12, 4  ;;  %v315_v15 = vadd.f32 %v314_v13, %v300_v11 }
 0x119   :  { %v277_v16 = vadd.f32 %v276_v14, %v275_v12  ;;  %v316_v17 = vrot.slane %v315_v15, 4 }
 0x11b   :  { %v278_v18 = vrot.slane %v277_v16, 2  ;;  %v317_v19 = vadd.f32 %v316_v17, %v315_v15 }
 0x11d   :  { %v279_v20 = vadd.f32 %v278_v18, %v277_v16  ;;  %v318_v21 = vrot.slane %v317_v19, 2 }
 0x11f   :  { %v280_v22 = vrot.slane %v279_v20, 1  ;;  %v319_v23 = vadd.f32 %v318_v21, %v317_v19 }
 0x121   :  { %v281_v25 = vadd.f32 %v280_v22, %v279_v20  ;;  %v320_v26 = vrot.slane %v319_v23, 1 }
 0x123   :  { %v282_v28 = vadd.f32 %v281_v25, %v260_v24  ;;  %v321_v29 = vadd.f32 %v320_v26, %v319_v23 }
 0x125   :  { %283 = vst [vmem:[%s563_s3] sm:$0x1] %v282_v28  ;;  %v322_v30 = vadd.f32 %v321_v29, %v284_v27 }
 0x127   :  { %323 = vst [vmem:[%s563_s3 + $0x1] sm:$0x1] %v322_v30 }

// kernel: basic_block_forward.9
= control target key start
LH: loop header
LB: loop body
LE: loop exit
PB: predicated region body
PF: predicated region fallthrough
CT: control target
= control target key end

     0   :  { %v59_v14 = vlaneseq  ;;  %s494_s1 = inlined_call_operand.vmem [shape: f32[2,128], index: 1, kind: input, shape index: {}]   ;;  %s495_s4 = inlined_call_operand.vmem [shape: f32[2,128], index: 4, kind: input, shape index: {}]   ;;  %s496_s2 = inlined_call_operand.vmem [shape: f32[2,128], index: 2, kind: input, shape index: {}]   ;;  %s497_s5 = inlined_call_operand.vmem [shape: f32[2,128], index: 5, kind: input, shape index: {}]   ;;  %s498_s0 = inlined_call_operand.vmem [shape: f32[128,128], index: 0, kind: input, shape index: {}]   ;;  %s499_s3 = inlined_call_operand.vmem [shape: f32[128,128], index: 3, kind: input, shape index: {}]   ;;  %s500_s6 = inlined_call_operand.vmem [shape: f32[128,128], index: 6, kind: output, shape index: {}]  }
   0x1   :  { %v39_v0 = vld [vmem:[%s494_s1] sm:$0x3]  ;;  %v24_v26 = vld [vmem:[%s498_s0 + $0x8] sm:$0xff]  ;;  %v25_v27 = vld [vmem:[%s498_s0 + $0x10] sm:$0xff] }
   0x2   :  { %v41_v1 = vmul.f32 0.0078125, %v39_v0  ;;  %v115_v2 = vld [vmem:[%s495_s4] sm:$0x3]  ;;  %v60_v15 = vshrl.u32 %v59_v14, 7  ;;  %v100_v31 = vld [vmem:[%s499_s3 + $0x8] sm:$0xff]  ;;  %v101_v32 = vld [vmem:[%s499_s3 + $0x10] sm:$0xff] }
   0x3   :  { %v117_v3 = vmul.f32 0.0078125, %v115_v2  ;;  %v40_v17 = vld [vmem:[%s496_s2] sm:$0x3]  ;;  %v26_v36 = vld [vmem:[%s498_s0 + $0x18] sm:$0xff]  ;;  %v28_v44 = vld [vmem:[%s498_s0 + $0x28] sm:$0xff] }
   0x4   :  { %v42_v4 = vmul.f32 %v41_v1, %v41_v1  ;;  %v61_v20 = vsub.s32 0, %v60_v15  ;;  %v116_v21 = vld [vmem:[%s497_s5] sm:$0x3]  ;;  %v81_v33 = vsub.s32 1, %v60_v15  ;;  %v102_v37 = vld [vmem:[%s499_s3 + $0x18] sm:$0xff]  ;;  %v104_v45 = vld [vmem:[%s499_s3 + $0x28] sm:$0xff] }
   0x5   :  { %v118_v5 = vmul.f32 %v117_v3, %v117_v3  ;;  %v23_v24 = vld [vmem:[%s498_s0] sm:$0xff]  ;;  %v29_v50 = vld [vmem:[%s498_s0 + $0x30] sm:$0xff]  ;;  %v30_v52 = vld [vmem:[%s498_s0 + $0x38] sm:$0xff] }
   0x6   :  { %v44_v6 = vrot.slane %v42_v4, 7  ;;  %v99_v30 = vld [vmem:[%s499_s3] sm:$0xff]  ;;  %v105_v51 = vld [vmem:[%s499_s3 + $0x30] sm:$0xff]  ;;  %v106_v57 = vld [vmem:[%s499_s3 + $0x38] sm:$0xff] }
   0x7   :  { %v120_v7 = vrot.slane %v118_v5, 7  ;;  %v27_v38 = vld [vmem:[%s498_s0 + $0x20] sm:$0xff] }
   0x8   :  { %v46_v8 = vsub.f32 %v41_v1, %v44_v6  ;;  %v103_v43 = vld [vmem:[%s499_s3 + $0x20] sm:$0xff] }
   0x9   :  { %v122_v9 = vsub.f32 %v117_v3, %v120_v7  ;;  %v31_v58 = vld [vmem:[%s498_s0 + $0x40] sm:$0xff] }
   0xa   :  { %v47_v10 = vmax.f32 %v46_v8, 0.0  ;;  %v107_v59 = vld [vmem:[%s499_s3 + $0x40] sm:$0xff] }
   0xb   :  { %v123_v11 = vmax.f32 %v122_v9, 0.0 }
   0xc   :  { %v48_v12 = vadd.f32 1e-05, %v47_v10 }
   0xd   :  { %v124_v13 = vadd.f32 1e-05, %v123_v11 }
   0xe   :  { %227 = vrsqrt.f32 %v48_v12 }
   0xf   :  { %229 = vrsqrt.f32 %v124_v13 }
  0x18   :  { %v228_v16 = vpop.eup %227 }
  0x19   :  { %v230_v18 = vpop.eup %229  ;;  %v51_v19 = vrot.slane %v228_v16, 1 }
  0x1a   :  { %v127_v22 = vrot.slane %v230_v18, 1 }
  0x1b   :  { %v53_v23 = vmul.f32 %v51_v19, %v40_v17 }
  0x1c   :  { %v129_v25 = vmul.f32 %v127_v22, %v116_v21 }
  0x1d   :  { %v54_v28 = vmul.f32 %v53_v23, %v41_v1  ;;  %v287_v29 = vrot.slane %v53_v23, %v61_v20 }
  0x1e   :  { %v130_v34 = vmul.f32 %v129_v25, %v117_v3  ;;  %v298_v35 = vrot.slane %v129_v25, %v61_v20 }
  0x1f   :  { %v56_v39 = vrot.slane %v54_v28, 7  ;;  %v63_v40 = vmul.f32 %v287_v29, %v23_v24  ;;  %v64_v41 = vmul.f32 %v287_v29, %v24_v26  ;;  %v65_v42 = vmul.f32 %v287_v29, %v25_v27  ;;  %v32_v28 = vld [vmem:[%s498_s0 + $0x48] sm:$0xff] }
  0x20   :  { %v132_v46 = vrot.slane %v130_v34, 7  ;;  %v139_v47 = vmul.f32 %v298_v35, %v99_v30  ;;  %v140_v48 = vmul.f32 %v298_v35, %v100_v31  ;;  %v141_v49 = vmul.f32 %v298_v35, %v101_v32  ;;  %v108_v30 = vld [vmem:[%s499_s3 + $0x48] sm:$0xff] }
  0x21   :  { %v58_v53 = vsub.f32 %v40_v17, %v56_v39  ;;  %v66_v54 = vmul.f32 %v287_v29, %v26_v36  ;;  %v142_v55 = vmul.f32 %v298_v35, %v102_v37  ;;  %v67_v56 = vmul.f32 %v287_v29, %v27_v38  ;;  %v33_v36 = vld [vmem:[%s498_s0 + $0x50] sm:$0xff] }
  0x22   :  { %v134_v60 = vsub.f32 %v116_v21, %v132_v46  ;;  %v143_v61 = vmul.f32 %v298_v35, %v103_v43  ;;  %v68_v62 = vmul.f32 %v287_v29, %v28_v44  ;;  %v144_v63 = vmul.f32 %v298_v35, %v104_v45  ;;  %v109_v37 = vld [vmem:[%s499_s3 + $0x50] sm:$0xff] }
  0x23   :  { %v348_v0 = vrot.slane %v58_v53, %v81_v33  ;;  %v69_v1 = vmul.f32 %v287_v29, %v29_v50  ;;  %v145_v2 = vmul.f32 %v298_v35, %v105_v51  ;;  %v70_v3 = vmul.f32 %v287_v29, %v30_v52  ;;  %v35_v52 = vld [vmem:[%s498_s0 + $0x60] sm:$0xff] }
  0x24   :  { %v353_v4 = vrot.slane %v134_v60, %v81_v33  ;;  %v146_v5 = vmul.f32 %v298_v35, %v106_v57  ;;  %v71_v6 = vmul.f32 %v287_v29, %v31_v58  ;;  %v147_v7 = vmul.f32 %v298_v35, %v107_v59  ;;  %v111_v57 = vld [vmem:[%s499_s3 + $0x60] sm:$0xff] }
  0x25   :  { %v83_v8 = vadd.f32 %v348_v0, %v63_v40  ;;  %v84_v9 = vadd.f32 %v348_v0, %v64_v41  ;;  %v85_v10 = vadd.f32 %v348_v0, %v65_v42  ;;  %v86_v11 = vadd.f32 %v348_v0, %v66_v54  ;;  %v34_v42 = vld [vmem:[%s498_s0 + $0x58] sm:$0xff] }
  0x26   :  { %v159_v12 = vadd.f32 %v353_v4, %v139_v47  ;;  %v160_v13 = vadd.f32 %v353_v4, %v140_v48  ;;  %v161_v14 = vadd.f32 %v353_v4, %v141_v49  ;;  %v162_v15 = vadd.f32 %v353_v4, %v142_v55  ;;  %v110_v47 = vld [vmem:[%s499_s3 + $0x58] sm:$0xff] }
  0x27   :  { %v87_v16 = vadd.f32 %v348_v0, %v67_v56  ;;  %v163_v17 = vadd.f32 %v353_v4, %v143_v61  ;;  %v88_v18 = vadd.f32 %v348_v0, %v68_v62  ;;  %v164_v19 = vadd.f32 %v353_v4, %v144_v63  ;;  %v36_v62 = vld [vmem:[%s498_s0 + $0x68] sm:$0xff] }
  0x28   :  { %v175_v20 = vadd.f32 %v159_v12, %v83_v8  ;;  %v176_v21 = vadd.f32 %v160_v13, %v84_v9  ;;  %v177_v22 = vadd.f32 %v161_v14, %v85_v10  ;;  %v178_v23 = vadd.f32 %v162_v15, %v86_v11  ;;  %v112_v63 = vld [vmem:[%s499_s3 + $0x68] sm:$0xff]  ;;  %v113_v11 = vld [vmem:[%s499_s3 + $0x70] sm:$0xff] }
  0x29   :  { %v179_v24 = vadd.f32 %v163_v17, %v87_v16  ;;  %v180_v25 = vadd.f32 %v164_v19, %v88_v18  ;;  %v89_v26 = vadd.f32 %v348_v0, %v69_v1  ;;  %v165_v27 = vadd.f32 %v353_v4, %v145_v2  ;;  %v37_v1 = vld [vmem:[%s498_s0 + $0x70] sm:$0xff]  ;;  %v38_v16 = vld [vmem:[%s498_s0 + $0x78] sm:$0xff] }
  0x2a   :  { %v191_v31 = vmax.f32 %v175_v20, 0.0  ;;  %v192_v32 = vmax.f32 %v176_v21, 0.0  ;;  %v193_v33 = vmax.f32 %v177_v22, 0.0  ;;  %v194_v34 = vmax.f32 %v178_v23, 0.0  ;;  %v114_v17 = vld [vmem:[%s499_s3 + $0x78] sm:$0xff] }
  0x2b   :  { %v195_v38 = vmax.f32 %v179_v24, 0.0  ;;  %v196_v39 = vmax.f32 %v180_v25, 0.0  ;;  %v181_v40 = vadd.f32 %v165_v27, %v89_v26  ;;  %v90_v41 = vadd.f32 %v348_v0, %v70_v3 }
  0x2c   :  { %207 = vst [vmem:[%s500_s6] sm:$0xff] %v191_v31  ;;  %208 = vst [vmem:[%s500_s6 + $0x8] sm:$0xff] %v192_v32  ;;  %v166_v43 = vadd.f32 %v353_v4, %v146_v5  ;;  %v91_v44 = vadd.f32 %v348_v0, %v71_v6  ;;  %v167_v45 = vadd.f32 %v353_v4, %v147_v7 }
  0x2d   :  { %209 = vst [vmem:[%s500_s6 + $0x10] sm:$0xff] %v193_v33  ;;  %210 = vst [vmem:[%s500_s6 + $0x18] sm:$0xff] %v194_v34  ;;  %v72_v46 = vmul.f32 %v287_v29, %v32_v28  ;;  %v197_v48 = vmax.f32 %v181_v40, 0.0  ;;  %v148_v49 = vmul.f32 %v298_v35, %v108_v30  ;;  %v73_v50 = vmul.f32 %v287_v29, %v33_v36 }
  0x2e   :  { %211 = vst [vmem:[%s500_s6 + $0x20] sm:$0xff] %v195_v38  ;;  %212 = vst [vmem:[%s500_s6 + $0x28] sm:$0xff] %v196_v39  ;;  %v149_v51 = vmul.f32 %v298_v35, %v109_v37  ;;  %v182_v53 = vadd.f32 %v166_v43, %v90_v41  ;;  %v183_v54 = vadd.f32 %v167_v45, %v91_v44 }
  0x2f   :  { %v92_v55 = vadd.f32 %v348_v0, %v72_v46  ;;  %v74_v56 = vmul.f32 %v287_v29, %v34_v42  ;;  %213 = vst [vmem:[%s500_s6 + $0x30] sm:$0xff] %v197_v48  ;;  %v168_v58 = vadd.f32 %v353_v4, %v148_v49  ;;  %v93_v59 = vadd.f32 %v348_v0, %v73_v50 }
  0x30   :  { %v169_v60 = vadd.f32 %v353_v4, %v149_v51  ;;  %v150_v61 = vmul.f32 %v298_v35, %v110_v47  ;;  %v198_v2 = vmax.f32 %v182_v53, 0.0  ;;  %v199_v3 = vmax.f32 %v183_v54, 0.0 }
  0x31   :  { %v94_v5 = vadd.f32 %v348_v0, %v74_v56  ;;  %v75_v6 = vmul.f32 %v287_v29, %v35_v52  ;;  %v184_v7 = vadd.f32 %v168_v58, %v92_v55  ;;  %v151_v10 = vmul.f32 %v298_v35, %v111_v57 }
  0x32   :  { %v185_v8 = vadd.f32 %v169_v60, %v93_v59  ;;  %v170_v9 = vadd.f32 %v353_v4, %v150_v61  ;;  %214 = vst [vmem:[%s500_s6 + $0x38] sm:$0xff] %v198_v2  ;;  %215 = vst [vmem:[%s500_s6 + $0x40] sm:$0xff] %v199_v3  ;;  %v76_v13 = vmul.f32 %v287_v29, %v36_v62 }
  0x33   :  { %v95_v12 = vadd.f32 %v348_v0, %v75_v6  ;;  %v152_v14 = vmul.f32 %v298_v35, %v112_v63  ;;  %v77_v15 = vmul.f32 %v287_v29, %v37_v1  ;;  %v200_v18 = vmax.f32 %v184_v7, 0.0 }
  0x34   :  { %v201_v19 = vmax.f32 %v185_v8, 0.0  ;;  %v186_v20 = vadd.f32 %v170_v9, %v94_v5  ;;  %v171_v21 = vadd.f32 %v353_v4, %v151_v10  ;;  %v96_v22 = vadd.f32 %v348_v0, %v76_v13 }
  0x35   :  { %v172_v23 = vadd.f32 %v353_v4, %v152_v14  ;;  %v97_v24 = vadd.f32 %v348_v0, %v77_v15  ;;  %v153_v25 = vmul.f32 %v298_v35, %v113_v11  ;;  %216 = vst [vmem:[%s500_s6 + $0x48] sm:$0xff] %v200_v18  ;;  %v78_v28 = vmul.f32 %v287_v29, %v38_v16 }
  0x36   :  { %217 = vst [vmem:[%s500_s6 + $0x50] sm:$0xff] %v201_v19  ;;  %v202_v26 = vmax.f32 %v186_v20, 0.0  ;;  %v187_v27 = vadd.f32 %v171_v21, %v95_v12  ;;  %v154_v30 = vmul.f32 %v298_v35, %v114_v17 }
  0x37   :  { %v188_v31 = vadd.f32 %v172_v23, %v96_v22  ;;  %v173_v32 = vadd.f32 %v353_v4, %v153_v25  ;;  %v98_v34 = vadd.f32 %v348_v0, %v78_v28 }
  0x38   :  { %218 = vst [vmem:[%s500_s6 + $0x58] sm:$0xff] %v202_v26  ;;  %v203_v33 = vmax.f32 %v187_v27, 0.0  ;;  %v174_v36 = vadd.f32 %v353_v4, %v154_v30 }
  0x39   :  { %v204_v37 = vmax.f32 %v188_v31, 0.0  ;;  %v189_v38 = vadd.f32 %v173_v32, %v97_v24 }
  0x3a   :  { %219 = vst [vmem:[%s500_s6 + $0x60] sm:$0xff] %v203_v33  ;;  %v190_v29 = vadd.f32 %v174_v36, %v98_v34 }
  0x3b   :  { %220 = vst [vmem:[%s500_s6 + $0x68] sm:$0xff] %v204_v37  ;;  %v205_v35 = vmax.f32 %v189_v38, 0.0 }
  0x3c   :  { %v206_v39 = vmax.f32 %v190_v29, 0.0 }
  0x3d   :  { %221 = vst [vmem:[%s500_s6 + $0x70] sm:$0xff] %v205_v35 }
  0x3e   :  { %222 = vst [vmem:[%s500_s6 + $0x78] sm:$0xff] %v206_v39 }

</bundles_post_ra>
